<compile_context>
chip_gen: v7x
topology: tpu7x:2x2x1
jax: 0.10.0
libtpu: 0.0.40
codegen_flags: <defaults>
</compile_context>

<pallas_src>
import functools

import jax
import jax.numpy as jnp
from jax.experimental import pallas as pl
from jax.experimental.pallas import tpu as pltpu


def _round_up(x, m):
    return ((x + m - 1) // m) * m


def _cdiv(a, b):
    return (a + b - 1) // b


_VMEM_BUDGET = 40 * 1024 * 1024   # stay well under v7x's 64 MiB physical VMEM


def _wavenet_kernel(x_ref, wg_ref, wf_ref, bg_ref, bf_ref, o_ref, win_ref, *,
                    K, dilation, halo_lanes, tl, c_out, compute_dtype):
    """Grid step (b, j): one batch element, one lane tile of `tl` output samples.

    x_ref:   (1, C_in, tl)            current input tile (native dtype)
    wg_ref:  (K, C_out, C_in)         gate-half conv weights (resident)
    wf_ref:  (K, C_out, C_in)         filter-half conv weights (resident)
    bg_ref/bf_ref: (C_out, 1)         biases (f32, resident)
    o_ref:   (1, C_out, tl)           gated output tile (lane-dense)
    win_ref: (C_in, halo_lanes + tl)  VMEM window: [lookback context | tile]
    """
    j = pl.program_id(1)
    c_in = win_ref.shape[0]

    # First time tile of each batch element: the lookback context is the
    # causal zero padding.
    @pl.when(j == 0)
    def _():
        win_ref[:, :halo_lanes] = jnp.zeros((c_in, halo_lanes), compute_dtype)

    # Stage the current tile next to the carried context (aligned lane store,
    # cast to the MXU operand dtype here so HBM streams the native dtype).
    win_ref[:, halo_lanes:] = x_ref[0].astype(compute_dtype)

    # K small MXU matmuls per half, accumulated in f32.
    acc_g = jnp.zeros((c_out, tl), jnp.float32)
    acc_f = jnp.zeros((c_out, tl), jnp.float32)
    for k in range(K):
        off = halo_lanes - (K - 1 - k) * dilation       # static lane offset
        tap = win_ref[:, off:off + tl]                  # (C_in, tl)
        acc_g = acc_g + jnp.dot(wg_ref[k], tap, preferred_element_type=jnp.float32)
        acc_f = acc_f + jnp.dot(wf_ref[k], tap, preferred_element_type=jnp.float32)
    acc_g = acc_g + bg_ref[...]
    acc_f = acc_f + bf_ref[...]

    # sigmoid(a) == 0.5 * (1 + tanh(0.5 * a)): one EUP tanh per element.
    gate = 0.5 * (1.0 + jnp.tanh(0.5 * acc_g))
    filt = jnp.tanh(acc_f)
    o_ref[0] = (gate * filt).astype(o_ref.dtype)

    # Carry the last `halo_lanes` input columns as the next tile's lookback
    # context (aligned VMEM copy; time axis executes in order).
    @pl.when(j + 1 < pl.num_programs(1))
    def _():
        win_ref[:, :halo_lanes] = win_ref[:, tl:tl + halo_lanes]


def wavenet_layer(x, context, weight, bias, *, out_channels, dilation,
                  padding=True, compute_dtype=jnp.bfloat16, out_dtype=None,
                  time_tile=4096):
    """Pallas TPU implementation of WaveNetLayer.forward.

    x:       (B, C_in, N)    channel-first input
    context: (B, N, H)       unused by the reference forward (kept for parity)
    weight:  (C_in, C_in, K) CausalConv1d weight (conv out channels == in channels)
    bias:    (C_in,)
    returns: (B, out_channels, N)                   if padding=True
             (B, out_channels, N - (K-1)*dilation)  if padding=False (valid conv)
    """
    del context  # the reference forward never touches it
    B, C_in, N = x.shape
    C_conv_out, C_w_in, K = weight.shape
    assert C_conv_out == C_in and C_w_in == C_in, "CausalConv1d is in_ch -> in_ch"
    assert C_in == 2 * out_channels, (
        f"gated split needs in_channels == 2*out_channels (got {C_in}, {out_channels})")

    if out_dtype is None:
        out_dtype = x.dtype
    halo = (K - 1) * dilation
    halo_lanes = max(128, _round_up(max(halo, 1), 128))
    N_out = N if padding else N - halo
    assert N_out > 0, "sequence too short for padding=False"

    x_bytes = jnp.dtype(x.dtype).itemsize
    c_bytes = jnp.dtype(compute_dtype).itemsize
    o_bytes = jnp.dtype(out_dtype).itemsize

    def vmem_bytes(tl):
        return (2 * C_in * tl * x_bytes                   # input tile (double-buffered)
                + 2 * out_channels * tl * o_bytes         # output tile (double-buffered)
                + C_in * (halo_lanes + tl) * c_bytes      # window scratch
                + 4 * K * out_channels * C_in * c_bytes   # wg + wf (double-buffered)
                + 4 * 8 * 128 * 4                         # padded biases
                + (2 << 20))                              # headroom / internal scratch

    # Lane tile: as large as the VMEM budget allows (bounded by time_tile),
    # then refit to the sequence so padding waste is < 128 columns per tile.
    tl_cap = max(128, _round_up(time_tile, 128))
    while tl_cap > 128 and vmem_bytes(tl_cap) > _VMEM_BUDGET:
        tl_cap -= 128
    num_t = _cdiv(N, tl_cap)
    tl = _round_up(_cdiv(N, num_t), 128)
    n_pad = num_t * tl

    x_work = x if n_pad == N else jnp.pad(x, ((0, 0), (0, 0), (0, n_pad - N)))

    # Gate (sigmoid) half = channels [:out_channels], filter (tanh) half = the
    # rest — matches the PyTorch slicing.  Layout (K, C_out, C_in) so each tap
    # is a sublane-aligned matmul LHS.
    wg = jnp.transpose(weight[:out_channels], (2, 0, 1)).astype(compute_dtype)
    wf = jnp.transpose(weight[out_channels:], (2, 0, 1)).astype(compute_dtype)
    bg = bias[:out_channels].reshape(out_channels, 1).astype(jnp.float32)
    bf = bias[out_channels:].reshape(out_channels, 1).astype(jnp.float32)

    kernel = functools.partial(
        _wavenet_kernel, K=K, dilation=dilation, halo_lanes=halo_lanes,
        tl=tl, c_out=out_channels, compute_dtype=compute_dtype)

    out = pl.pallas_call(
        kernel,
        out_shape=jax.ShapeDtypeStruct((B, out_channels, n_pad), out_dtype),
        grid_spec=pltpu.PrefetchScalarGridSpec(
            num_scalar_prefetch=0,
            grid=(B, num_t),
            in_specs=[
                pl.BlockSpec((1, C_in, tl), lambda b, j: (b, 0, j)),
                pl.BlockSpec((K, out_channels, C_in), lambda b, j: (0, 0, 0)),
                pl.BlockSpec((K, out_channels, C_in), lambda b, j: (0, 0, 0)),
                pl.BlockSpec((out_channels, 1), lambda b, j: (0, 0)),
                pl.BlockSpec((out_channels, 1), lambda b, j: (0, 0)),
            ],
            out_specs=pl.BlockSpec((1, out_channels, tl), lambda b, j: (b, 0, j)),
            scratch_shapes=[pltpu.VMEM((C_in, halo_lanes + tl), compute_dtype)],
        ),
        compiler_params=pltpu.CompilerParams(
            # Batch tiles are independent (megacore-shardable); time tiles carry
            # the lookback context and must run in order.
            dimension_semantics=("parallel", "arbitrary"),
            vmem_limit_bytes=int(min(60 * 2**20,
                                     max(32 * 2**20, vmem_bytes(tl) * 3 // 2))),
        ),
    )(x_work, wg, wf, bg, bf)

    if padding:
        return out if n_pad == N else out[:, :, :N]
    return out[:, :, halo:halo + N_out]


def _ref_forward(x, weight, bias, out_channels, dilation, padding=True):
    """Pure-JAX reference (mirrors PyTorch causal conv + gated activation)."""
    B, C_in, N = x.shape
    K = weight.shape[-1]
    halo = (K - 1) * dilation
    xp = jnp.pad(x, ((0, 0), (0, 0), (halo, 0))) if padding else x
    N_out = N if padding else N - halo
    out = jnp.zeros((B, C_in, N_out), jnp.float32)
    for k in range(K):
        out = out + jnp.einsum("oc,bcn->bon", weight[:, :, k],
                               xp[:, :, k * dilation: k * dilation + N_out])
    out = out + bias[None, :, None]
    return jax.nn.sigmoid(out[:, :out_channels]) * jnp.tanh(out[:, out_channels:])


if __name__ == "__main__":
    key = jax.random.PRNGKey(0)
    ks = jax.random.split(key, 8)

    # Case 1: module-default-ish small shapes (B=2, C_in=8, N=16, K=3, d=2).
    B, out_ch, K, d, N, ctx = 2, 4, 3, 2, 16, 4
    in_ch = 2 * out_ch
    x = jax.random.normal(ks[0], (B, in_ch, N), jnp.float32)
    context = jax.random.normal(ks[1], (B, N, ctx), jnp.float32)  # unused by forward
    w = 0.1 * jax.random.normal(ks[2], (in_ch, in_ch, K), jnp.float32)
    b = 0.1 * jax.random.normal(ks[3], (in_ch,), jnp.float32)
    ref = _ref_forward(x, w, b, out_ch, d, padding=True)

    # 1a) f32 MXU operands: exact path
    out32 = wavenet_layer(x, context, w, b, out_channels=out_ch, dilation=d,
                          compute_dtype=jnp.float32)
    jax.block_until_ready(out32)
    assert out32.shape == (B, out_ch, N), out32.shape
    assert jnp.allclose(out32, ref, atol=1e-5, rtol=1e-5), "f32 mismatch vs reference"

    # 1b) default bf16 MXU-operand path (f32 accumulation/activations)
    outbf = wavenet_layer(x, context, w, b, out_channels=out_ch, dilation=d)
    jax.block_until_ready(outbf)
    assert outbf.shape == (B, out_ch, N), outbf.shape
    assert jnp.allclose(outbf, ref, atol=3e-2, rtol=3e-2), "bf16 mismatch vs reference"

    # 1c) padding=False (valid conv, shorter output)
    out_np = wavenet_layer(x, context, w, b, out_channels=out_ch, dilation=d,
                           padding=False, compute_dtype=jnp.float32)
    jax.block_until_ready(out_np)
    ref_np = _ref_forward(x, w, b, out_ch, d, padding=False)
    assert out_np.shape == (B, out_ch, N - (K - 1) * d), out_np.shape
    assert jnp.allclose(out_np, ref_np, atol=1e-5, rtol=1e-5), "padding=False mismatch"

    # Case 2: multiple time tiles (cross-tile halo carry), ragged N, small tile.
    B2, out2, K2, d2, N2 = 2, 8, 3, 5, 300
    in2 = 2 * out2
    x2 = jax.random.normal(ks[4], (B2, in2, N2), jnp.float32)
    w2 = 0.1 * jax.random.normal(ks[5], (in2, in2, K2), jnp.float32)
    b2 = 0.1 * jax.random.normal(ks[6], (in2,), jnp.float32)
    out2v = wavenet_layer(x2, None, w2, b2, out_channels=out2, dilation=d2,
                          compute_dtype=jnp.float32, time_tile=128)
    jax.block_until_ready(out2v)
    ref2 = _ref_forward(x2, w2, b2, out2, d2, padding=True)
    assert out2v.shape == (B2, out2, N2), out2v.shape
    assert jnp.allclose(out2v, ref2, atol=1e-5, rtol=1e-5), "multi-tile mismatch"

    # Case 3: lookback halo larger than the lane tile (dilation 130 -> halo 260).
    d3 = 130
    out3v = wavenet_layer(x2, None, w2, b2, out_channels=out2, dilation=d3,
                          compute_dtype=jnp.float32, time_tile=128)
    jax.block_until_ready(out3v)
    ref3 = _ref_forward(x2, w2, b2, out2, d3, padding=True)
    assert jnp.allclose(out3v, ref3, atol=1e-5, rtol=1e-5), "large-halo mismatch"

    print("KERNEL_OK")
</pallas_src>

<mosaic_0001>
module attributes {stable_mosaic.version = 11 : i64} {
  func.func @_wavenet_kernel(%arg0: i32, %arg1: i32, %arg2: memref<1x8x128xf32, #tpu.memory_space<vmem>>, %arg3: memref<3x4x8xf32, #tpu.memory_space<vmem>>, %arg4: memref<3x4x8xf32, #tpu.memory_space<vmem>>, %arg5: memref<4x1xf32, #tpu.memory_space<vmem>>, %arg6: memref<4x1xf32, #tpu.memory_space<vmem>>, %arg7: memref<1x4x128xf32, #tpu.memory_space<vmem>>, %arg8: memref<8x256xf32, #tpu.memory_space<vmem>>) attributes {dimension_semantics = [#tpu.dimension_semantics<parallel>, #tpu.dimension_semantics<arbitrary>], iteration_bounds = array<i64: 2, 1>, scalar_prefetch = 0 : i64, scratch_operands = 1 : i64, tpu.core_type = #tpu.core_type<tc>, window_params = [{transform_indices = @transform_0, window_bounds = array<i64: 1, 8, 128>}, {pipeline_mode = #tpu.pipeline_mode<synchronous>, transform_indices = @transform_1, window_bounds = array<i64: 3, 4, 8>}, {pipeline_mode = #tpu.pipeline_mode<synchronous>, transform_indices = @transform_2, window_bounds = array<i64: 3, 4, 8>}, {pipeline_mode = #tpu.pipeline_mode<synchronous>, transform_indices = @transform_3, window_bounds = array<i64: 4, 1>}, {pipeline_mode = #tpu.pipeline_mode<synchronous>, transform_indices = @transform_4, window_bounds = array<i64: 4, 1>}, {transform_indices = @transform_5, window_bounds = array<i64: 1, 4, 128>}]} {
    %c0_i32 = arith.constant 0 : i32
    %0 = arith.cmpi eq, %arg1, %c0_i32 : i32
    %1 = arith.extui %0 : i1 to i32
    %c0_i32_0 = arith.constant 0 : i32
    %2 = arith.cmpi ne, %1, %c0_i32_0 : i32
    scf.if %2 {
      %cst_43 = arith.constant 0.000000e+00 : f32
      %57 = vector.broadcast %cst_43 : f32 to vector<8x128xf32>
      %c0_44 = arith.constant 0 : index
      %c0_45 = arith.constant 0 : index
      %58 = vector.load %arg8[%c0_44, %c0_45] : memref<8x256xf32, #tpu.memory_space<vmem>>, vector<8x128xf32>
      tpu.vector_store %arg8[%c0_44, %c0_45], %57 {strides = array<i32>} : memref<8x256xf32, #tpu.memory_space<vmem>>, vector<8x128xf32>,
    } else {
    }
    %c0 = arith.constant 0 : index
    %c0_1 = arith.constant 0 : index
    %c0_2 = arith.constant 0 : index
    %3 = vector.load %arg2[%c0, %c0_1, %c0_2] : memref<1x8x128xf32, #tpu.memory_space<vmem>>, vector<1x8x128xf32>
    %4 = vector.shape_cast %3 : vector<1x8x128xf32> to vector<8x128xf32>
    %c0_3 = arith.constant 0 : index
    %c128 = arith.constant 128 : index
    %5 = vector.load %arg8[%c0_3, %c128] : memref<8x256xf32, #tpu.memory_space<vmem>>, vector<8x128xf32>
    tpu.vector_store %arg8[%c0_3, %c128], %4 {strides = array<i32>} : memref<8x256xf32, #tpu.memory_space<vmem>>, vector<8x128xf32>,
    %cst = arith.constant 0.000000e+00 : f32
    %6 = vector.broadcast %cst : f32 to vector<4x128xf32>
    %cst_4 = arith.constant 0.000000e+00 : f32
    %7 = vector.broadcast %cst_4 : f32 to vector<4x128xf32>
    %c0_5 = arith.constant 0 : index
    %c124 = arith.constant 124 : index
    %8 = vector.load %arg8[%c0_5, %c124] : memref<8x256xf32, #tpu.memory_space<vmem>>, vector<8x128xf32>
    %c0_6 = arith.constant 0 : index
    %c0_7 = arith.constant 0 : index
    %c0_8 = arith.constant 0 : index
    %9 = vector.load %arg3[%c0_6, %c0_7, %c0_8] : memref<3x4x8xf32, #tpu.memory_space<vmem>>, vector<1x4x8xf32>
    %10 = vector.shape_cast %9 : vector<1x4x8xf32> to vector<4x8xf32>
    %cst_9 = arith.constant dense<0.000000e+00> : vector<4x128xf32>
    %11 = tpu.matmul %10, %8, %cst_9 {dimension_numbers = #tpu.dot_dimension_numbers<[1], [0], [0], [1], [0, 0, 1, 1], [], []>} : vector<4x8xf32>, vector<8x128xf32>, vector<4x128xf32> -> vector<4x128xf32>
    %12 = arith.addf %6, %11 : vector<4x128xf32>
    %c0_10 = arith.constant 0 : index
    %c0_11 = arith.constant 0 : index
    %c0_12 = arith.constant 0 : index
    %13 = vector.load %arg4[%c0_10, %c0_11, %c0_12] : memref<3x4x8xf32, #tpu.memory_space<vmem>>, vector<1x4x8xf32>
    %14 = vector.shape_cast %13 : vector<1x4x8xf32> to vector<4x8xf32>
    %cst_13 = arith.constant dense<0.000000e+00> : vector<4x128xf32>
    %15 = tpu.matmul %14, %8, %cst_13 {dimension_numbers = #tpu.dot_dimension_numbers<[1], [0], [0], [1], [0, 0, 1, 1], [], []>} : vector<4x8xf32>, vector<8x128xf32>, vector<4x128xf32> -> vector<4x128xf32>
    %16 = arith.addf %7, %15 : vector<4x128xf32>
    %c0_14 = arith.constant 0 : index
    %c126 = arith.constant 126 : index
    %17 = vector.load %arg8[%c0_14, %c126] : memref<8x256xf32, #tpu.memory_space<vmem>>, vector<8x128xf32>
    %c1 = arith.constant 1 : index
    %c0_15 = arith.constant 0 : index
    %c0_16 = arith.constant 0 : index
    %18 = vector.load %arg3[%c1, %c0_15, %c0_16] : memref<3x4x8xf32, #tpu.memory_space<vmem>>, vector<1x4x8xf32>
    %19 = vector.shape_cast %18 : vector<1x4x8xf32> to vector<4x8xf32>
    %cst_17 = arith.constant dense<0.000000e+00> : vector<4x128xf32>
    %20 = tpu.matmul %19, %17, %cst_17 {dimension_numbers = #tpu.dot_dimension_numbers<[1], [0], [0], [1], [0, 0, 1, 1], [], []>} : vector<4x8xf32>, vector<8x128xf32>, vector<4x128xf32> -> vector<4x128xf32>
    %21 = arith.addf %12, %20 : vector<4x128xf32>
    %c1_18 = arith.constant 1 : index
    %c0_19 = arith.constant 0 : index
    %c0_20 = arith.constant 0 : index
    %22 = vector.load %arg4[%c1_18, %c0_19, %c0_20] : memref<3x4x8xf32, #tpu.memory_space<vmem>>, vector<1x4x8xf32>
    %23 = vector.shape_cast %22 : vector<1x4x8xf32> to vector<4x8xf32>
    %cst_21 = arith.constant dense<0.000000e+00> : vector<4x128xf32>
    %24 = tpu.matmul %23, %17, %cst_21 {dimension_numbers = #tpu.dot_dimension_numbers<[1], [0], [0], [1], [0, 0, 1, 1], [], []>} : vector<4x8xf32>, vector<8x128xf32>, vector<4x128xf32> -> vector<4x128xf32>
    %25 = arith.addf %16, %24 : vector<4x128xf32>
    %c0_22 = arith.constant 0 : index
    %c128_23 = arith.constant 128 : index
    %26 = vector.load %arg8[%c0_22, %c128_23] : memref<8x256xf32, #tpu.memory_space<vmem>>, vector<8x128xf32>
    %c2 = arith.constant 2 : index
    %c0_24 = arith.constant 0 : index
    %c0_25 = arith.constant 0 : index
    %27 = vector.load %arg3[%c2, %c0_24, %c0_25] : memref<3x4x8xf32, #tpu.memory_space<vmem>>, vector<1x4x8xf32>
    %28 = vector.shape_cast %27 : vector<1x4x8xf32> to vector<4x8xf32>
    %cst_26 = arith.constant dense<0.000000e+00> : vector<4x128xf32>
    %29 = tpu.matmul %28, %26, %cst_26 {dimension_numbers = #tpu.dot_dimension_numbers<[1], [0], [0], [1], [0, 0, 1, 1], [], []>} : vector<4x8xf32>, vector<8x128xf32>, vector<4x128xf32> -> vector<4x128xf32>
    %30 = arith.addf %21, %29 : vector<4x128xf32>
    %c2_27 = arith.constant 2 : index
    %c0_28 = arith.constant 0 : index
    %c0_29 = arith.constant 0 : index
    %31 = vector.load %arg4[%c2_27, %c0_28, %c0_29] : memref<3x4x8xf32, #tpu.memory_space<vmem>>, vector<1x4x8xf32>
    %32 = vector.shape_cast %31 : vector<1x4x8xf32> to vector<4x8xf32>
    %cst_30 = arith.constant dense<0.000000e+00> : vector<4x128xf32>
    %33 = tpu.matmul %32, %26, %cst_30 {dimension_numbers = #tpu.dot_dimension_numbers<[1], [0], [0], [1], [0, 0, 1, 1], [], []>} : vector<4x8xf32>, vector<8x128xf32>, vector<4x128xf32> -> vector<4x128xf32>
    %34 = arith.addf %25, %33 : vector<4x128xf32>
    %c0_31 = arith.constant 0 : index
    %c0_32 = arith.constant 0 : index
    %35 = vector.load %arg5[%c0_31, %c0_32] : memref<4x1xf32, #tpu.memory_space<vmem>>, vector<4x1xf32>
    %36 = vector.broadcast %35 : vector<4x1xf32> to vector<4x128xf32>
    %37 = arith.addf %30, %36 : vector<4x128xf32>
    %c0_33 = arith.constant 0 : index
    %c0_34 = arith.constant 0 : index
    %38 = vector.load %arg6[%c0_33, %c0_34] : memref<4x1xf32, #tpu.memory_space<vmem>>, vector<4x1xf32>
    %39 = vector.broadcast %38 : vector<4x1xf32> to vector<4x128xf32>
    %40 = arith.addf %34, %39 : vector<4x128xf32>
    %cst_35 = arith.constant 5.000000e-01 : f32
    %41 = vector.broadcast %cst_35 : f32 to vector<4x128xf32>
    %42 = arith.mulf %41, %37 : vector<4x128xf32>
    %43 = math.tanh %42 : vector<4x128xf32>
    %cst_36 = arith.constant 1.000000e+00 : f32
    %44 = vector.broadcast %cst_36 : f32 to vector<4x128xf32>
    %45 = arith.addf %44, %43 : vector<4x128xf32>
    %cst_37 = arith.constant 5.000000e-01 : f32
    %46 = vector.broadcast %cst_37 : f32 to vector<4x128xf32>
    %47 = arith.mulf %46, %45 : vector<4x128xf32>
    %48 = math.tanh %40 : vector<4x128xf32>
    %49 = arith.mulf %47, %48 : vector<4x128xf32>
    %c0_38 = arith.constant 0 : index
    %c0_39 = arith.constant 0 : index
    %c0_40 = arith.constant 0 : index
    %50 = vector.load %arg7[%c0_38, %c0_39, %c0_40] : memref<1x4x128xf32, #tpu.memory_space<vmem>>, vector<1x4x128xf32>
    %51 = vector.shape_cast %50 : vector<1x4x128xf32> to vector<4x128xf32>
    %52 = vector.shape_cast %49 : vector<4x128xf32> to vector<1x4x128xf32>
    tpu.vector_store %arg7[%c0_38, %c0_39, %c0_40], %52 {strides = array<i32>} : memref<1x4x128xf32, #tpu.memory_space<vmem>>, vector<1x4x128xf32>,
    %c1_i32 = arith.constant 1 : i32
    %53 = arith.addi %arg1, %c1_i32 : i32
    %c1_i32_41 = arith.constant 1 : i32
    %54 = arith.cmpi slt, %53, %c1_i32_41 : i32
    %55 = arith.extui %54 : i1 to i32
    %c0_i32_42 = arith.constant 0 : i32
    %56 = arith.cmpi ne, %55, %c0_i32_42 : i32
    scf.if %56 {
      %c0_43 = arith.constant 0 : index
      %c128_44 = arith.constant 128 : index
      %57 = vector.load %arg8[%c0_43, %c128_44] : memref<8x256xf32, #tpu.memory_space<vmem>>, vector<8x128xf32>
      %c0_45 = arith.constant 0 : index
      %c0_46 = arith.constant 0 : index
      %58 = vector.load %arg8[%c0_45, %c0_46] : memref<8x256xf32, #tpu.memory_space<vmem>>, vector<8x128xf32>
      tpu.vector_store %arg8[%c0_45, %c0_46], %57 {strides = array<i32>} : memref<8x256xf32, #tpu.memory_space<vmem>>, vector<8x128xf32>,
    } else {
    }
    return
  }
  func.func @transform_0(%arg0: i32, %arg1: i32) -> (i32, i32, i32) {
    %c0_i32 = arith.constant 0 : i32
    %c0_i32_0 = arith.constant 0 : i32
    return %arg0, %c0_i32, %arg1 : i32, i32, i32
  }
  func.func @transform_1(%arg0: i32, %arg1: i32) -> (i32, i32, i32) {
    %c0_i32 = arith.constant 0 : i32
    %c0_i32_0 = arith.constant 0 : i32
    %c0_i32_1 = arith.constant 0 : i32
    %c0_i32_2 = arith.constant 0 : i32
    return %c0_i32, %c0_i32_0, %c0_i32_1 : i32, i32, i32
  }
  func.func @transform_2(%arg0: i32, %arg1: i32) -> (i32, i32, i32) {
    %c0_i32 = arith.constant 0 : i32
    %c0_i32_0 = arith.constant 0 : i32
    %c0_i32_1 = arith.constant 0 : i32
    %c0_i32_2 = arith.constant 0 : i32
    return %c0_i32, %c0_i32_0, %c0_i32_1 : i32, i32, i32
  }
  func.func @transform_3(%arg0: i32, %arg1: i32) -> (i32, i32) {
    %c0_i32 = arith.constant 0 : i32
    %c0_i32_0 = arith.constant 0 : i32
    %c0_i32_1 = arith.constant 0 : i32
    return %c0_i32, %c0_i32_0 : i32, i32
  }
  func.func @transform_4(%arg0: i32, %arg1: i32) -> (i32, i32) {
    %c0_i32 = arith.constant 0 : i32
    %c0_i32_0 = arith.constant 0 : i32
    %c0_i32_1 = arith.constant 0 : i32
    return %c0_i32, %c0_i32_0 : i32, i32
  }
  func.func @transform_5(%arg0: i32, %arg1: i32) -> (i32, i32, i32) {
    %c0_i32 = arith.constant 0 : i32
    %c0_i32_0 = arith.constant 0 : i32
    return %arg0, %c0_i32, %arg1 : i32, i32, i32
  }
}

</mosaic_0001>

<bundles_post_ra>
// kernel: tpu_custom_call.1
= control target key start
LH: loop header
LB: loop body
LE: loop exit
PB: predicated region body
PF: predicated region fallthrough
CT: control target
= control target key end

     0   :  { %10 = vsyncpa [#allocation4], 0  ;;  %s1460_s0 = inlined_call_operand.hbm [shape: f32[2,8,128], index: 0, kind: input, shape index: {}]   ;;  %s1461_s1 = inlined_call_operand.vmem [shape: f32[3,4,8], index: 1, kind: input, shape index: {}]   ;;  %s1462_s2 = inlined_call_operand.hbm [shape: f32[3,4,8], index: 2, kind: input, shape index: {}]   ;;  %s1463_s3 = inlined_call_operand.vmem [shape: f32[4,1], index: 3, kind: input, shape index: {}]   ;;  %s1464_s4 = inlined_call_operand.vmem [shape: f32[4,1], index: 4, kind: input, shape index: {}]   ;;  %s1465_s5 = inlined_call_operand.hbm [shape: f32[2,4,128], index: 5, kind: output, shape index: {}]  }
   0x1   :  { %12 = vsyncpa [#allocation4 + $0x1], 0 }
   0x2   :  { %13 = vsyncpa [#allocation7], 0 }
   0x3   :  { %14 = vsyncpa [#allocation5], 0 }
   0x4   :  { %16 = vsyncpa [#allocation5 + $0x1], 0  ;;  %s1218_s18 = smov 0   ;;  %s1220_s19 = smov 0  }
   0x5   :  { %s1222_s20 = smov 0   ;;  %s1224_s21 = smov 0  }
   0x6   :  { %s1226_s22 = smov 0   ;;  %s1228_s23 = smov 0  }
   0x7 LB: > { %s881_s24 = sadd.s32 4294967295, %s1176_s23   ;;  %s882_s25 = sadd.s32 4294967294, %s1176_s23   ;;  %s1176_s23 = sphi %s1228_s23, %s22_s23   ;;  %s1172_s22 = sphi %s1226_s22, %s1489_s22   ;;  %s1168_s21 = sphi %s1224_s21, %s1488_s21   ;;  %s1164_s20 = sphi %s1222_s20, %s1487_s20   ;;  %s1160_s19 = sphi %s1220_s19, %s1486_s19   ;;  %s1156_s18 = sphi %s1218_s18, %s1485_s18  }
   0x8   : > { %p56_p0 = scmp.ne.s32.totalorder %s1160_s19, %s1156_s18  ;;  %p1252_p1 = scmp.eq.s32.totalorder %s881_s24, 0 }
   0x9   : > { %p1256_p2 = scmp.eq.s32.totalorder %s881_s24, 1  ;;  %p172_p3 = scmp.eq.s32.totalorder %s882_s25, 1 }
   0xa   : > { %s1470_s26 = scalar_select %p1252_p1, 1, 0 }
   0xb   : > { %s1471_s27 = scalar_select %p1256_p2, 1, 0 }
   0xc   : > { %p1262_p4 = por %p1252_p1, %p56_p0  ;;  %p883_p5 = scmp.ge.s32.totalorder %s1176_s23, 1 }
   0xd   : > { %p1267_p6 = por %p172_p3, %p56_p0  ;;  %p179_p7 = scmp.lt.s32.totalorder %s1176_s23, 3 }
   0xe   : > { %s1472_s28 = scalar_select %p1262_p4, 1, 0 }
   0xf   : > { %s1473_s29 = scalar_select %p1267_p6, 1, 0 }
  0x10   : > { %p1272_p8 = pnand %p883_p5, %p179_p7  ;;  %s1178_s6 = smov [#allocation6]  }
  0x11   : > { %s194_s7 = sshll.u32 %s1178_s6, 4  ;;  %s34_s9 = sadd.s32 1, %s1172_s22  ;;  %s195_s7 = int_to_ptr.vmem [resolvable:$true] %s194_s7 }
  0x12   : > { %s1474_s30 = scalar_select %p1272_p8, 1, 0 }
  0x13   : > { %p954_p9 = pneg %p1272_p8  ;;  %s1032_s12 = scalar_lea.hbm %s1462_s2, 192 }
  0x14   : > { %p1033_p12 = scmp.ne.s32.totalorder %s1462_s2, %s1032_s12  ;;  %p1039_p5 = scmp.lt.u32.totalorder %s1032_s12, %s1462_s2 }
  0x15   : > { %p1281_p11 = pnand %p954_p9, %p1252_p1 }
  0x17   : > { %p1034_p13 = pneg %p1281_p11 }
  0x19   : > { %p1035_p0 = pnand %p1034_p13, %p1033_p12 }
  0x1b   : > { %p1036_p3 = pneg %p1035_p0 }
  0x1d   : > { %p1041_p7 = pnand %p1039_p5, %p1036_p3 }
  0x1f   : > { %1044 = shalt.err (!%p1041_p7)
}
  0x20   : > { %s1045_s17 = scalar_lea.vmem %s195_s7, 192  ;;  %p1053_p1 = scmp.lt.s32.totalorder %s195_s7, %s195_s7 }
  0x21   : > { %p1046_p9 = scmp.ne.s32.totalorder %s195_s7, %s1045_s17  ;;  %p1054_p4 = scmp.lt.s32.totalorder %s1045_s17, %s1045_s17 }
  0x23   : > { %p1048_p10 = pnand %p1046_p9, %p1034_p13  ;;  %p1055_p8 = por %p1054_p4, %p1053_p1 }
  0x25   : > { %p1049_p6 = pneg %p1048_p10 }
  0x27   : > { %p1056_p2 = pnand %p1055_p8, %p1049_p6 }
  0x29   : > { %1059 = shalt.err (!%p1056_p2)
}
  0x2a   : > { %s1179_s24 = smov 64   ;;  %s1180_s25 = smov 4  }
  0x2b   : > { %957 = dma.hbm_to_vmem [thread:$0]  (!%p1281_p11), %s1462_s2, 192, %s195_s7, [#allocation7], %s1179_s24, %s1179_s24, %s1180_s25  }
  0x2c   : > { %p36_p1 = scmp.ge.s32.totalorder %s34_s9, 2  ;;  %s43_s11 = sadd.s32 1, %s1164_s20 }
  0x2d   : > { %p50_p2 = scmp.ne.s32.totalorder %s1164_s20, %s1160_s19  ;;  %p51_p4 = scmp.eq.s32.totalorder %s1176_s23, 0 }
  0x2e   : > { %s1491_s9 = smov (%p36_p1, %s34_s9), 0  ;;  %p1477_p8 = scmp.ne.s32.totalorder %s1471_s27, 0 }
  0x2f   : > { %p1308_p6 = por %p51_p4, %p50_p2  ;;  %s38_s8 = ssub.s32 %s1172_s22, %s1491_s9 }
  0x30   : > { %p1314_p10 = por %p1477_p8, %p50_p2  ;;  %p967_p12 = scmp.lt.s32.totalorder %s1176_s23, 2 }
  0x31   : > { %p41_p11 = scmp.eq.s32.totalorder %s38_s8, 0  ;;  %s214_s7 = sand.u32 1, %s1164_s20  }
  0x32   : > { %s886_s14 = sshll.u32 %s214_s7, 3  ;;  %s887_s16 = sshll.u32 %s1172_s22, 7 }
  0x33   : > { %s1323_s15 = scalar_select %p41_p11, %s1164_s20, %s43_s11  }
  0x34   : > { %s1329_s25 = scalar_lea.hbm %s1460_s0, %s887_s16  ;;  %s218_s27 = scalar_lea.vmem [#allocation3], %s886_s14 }
  0x35   : > { %s226_s6 = sshll.u32 %s218_s27, 4  ;;  %p1335_p13 = pnand %p967_p12, %p1308_p6  ;;  %s1331_s6 = int_to_ptr.vmem [resolvable:$true] %s226_s6 }
  0x36   : > { %s215_s11 = scalar_lea.sflag [#allocation4], %s214_s7  ;;  %s1060_s8 = scalar_lea.hbm %s1329_s25, 128 }
  0x37   : > { %p1061_p0 = scmp.ne.s32.totalorder %s1329_s25, %s1060_s8  ;;  %p1062_p3 = pneg %p1335_p13 }
  0x38   : > { %s1065_s17 = scalar_lea.hbm %s1460_s0, 256  ;;  %p1066_p9 = scmp.lt.u32.totalorder %s1329_s25, %s1460_s0 }
  0x39   : > { %p1063_p5 = pnand %p1062_p3, %p1061_p0  ;;  %p1067_p1 = scmp.lt.u32.totalorder %s1065_s17, %s1060_s8 }
  0x3a   : > { %p1069_p4 = scmp.lt.u32.totalorder %s1060_s8, %s1329_s25 }
  0x3b   : > { %p1064_p7 = pneg %p1063_p5  ;;  %p1068_p2 = por %p1067_p1, %p1066_p9 }
  0x3d   : > { %p1070_p6 = por %p1069_p4, %p1068_p2 }
  0x3f   : > { %p1071_p8 = pnand %p1070_p6, %p1064_p7 }
  0x41   : > { %1074 = shalt.err (!%p1071_p8)
}
  0x42   : > { %s1075_s7 = scalar_lea.vmem %s1331_s6, 128  ;;  %s1181_s27 = smov [#allocation3]  }
  0x43   : > { %p1076_p12 = scmp.ne.s32.totalorder %s1331_s6, %s1075_s7  ;;  %s1080_s14 = sshll.u32 %s1181_s27, 4  ;;  %s1081_s14 = int_to_ptr.vmem [resolvable:$false] %s1080_s14 }
  0x44   : > { %s1082_s16 = scalar_lea.vmem %s1081_s14, 256  ;;  %p1083_p5 = scmp.lt.s32.totalorder %s1331_s6, %s1081_s14 }
  0x45   : > { %p1078_p11 = pnand %p1076_p12, %p1062_p3  ;;  %p1084_p9 = scmp.lt.s32.totalorder %s1082_s16, %s1075_s7 }
  0x47   : > { %p1079_p0 = pneg %p1078_p11  ;;  %p1085_p1 = por %p1084_p9, %p1083_p5 }
  0x49   : > { %p1086_p2 = pnand %p1085_p1, %p1079_p0 }
  0x4b   : > { %1089 = shalt.err (!%p1086_p2)
}
  0x4c   : > { %961 = dma.hbm_to_vmem [thread:$0]  (!%p1335_p13), %s1329_s25, 128, %s1331_s6, %s215_s11  }
  0x4d   : > { %p1480_p7 = scmp.ne.s32.totalorder %s1474_s30, 0 }
  0x4e   : > { %s1367_s8 = sand.u32 (!%p1480_p7), 1, %s1160_s19   ;;  %p1481_p3 = scmp.ne.s32.totalorder (!%p1480_p7), %s1472_s28, 0 }
  0x4f   : > { %235 = sbr.rel (%p1480_p7) target bundleno = 469 (0x1d5), region = 40  ;;  %s889_s17 = sshll.u32 (!%p1480_p7), %s1367_s8, 3 }
  0x50   : > { %s238_s12 = scalar_lea.sflag (!%p1480_p7), [#allocation4], %s1367_s8  ;;  %s241_s24 = scalar_lea.vmem (!%p1480_p7), [#allocation3], %s889_s17 }
  0x56   : > { %1143 = dma.done.wait (%p1481_p3), %s238_s12, 128  }
  0x57   : > { %1145 = vsyncadd (%p1481_p3), %s238_s12, 4294967168  ;;  %p1482_p4 = scmp.ne.s32.totalorder %s1470_s26, 0 }
  0x59   : > { %1147 = dma.done.wait (%p1482_p4), [#allocation7], 192  }
  0x5a   : > { %1149 = vsyncadd (%p1482_p4), [#allocation7], 4294967104  ;;  %v1182_v0 = vmov 0.0   ;;  %s1183_s30 = smov 4   ;;  %s1184_s25 = smov 2   ;;  %vm1185_vm0 = vmmov 0  }
  0x5b   : > { %368 = vrot.lane.b32.xlu1 %v1182_v0, %s1183_s30  ;;  %287 = vrot.lane.b32.xlu0 %v1182_v0, %s1184_s25  ;;  %v1186_v1 = vmov 0   ;;  %v277_v2 = vld [vmem:[%s241_s24] sm:$0xff]  ;;  %vm291_vm1 = vcmask 15360   ;;  %vm372_vm2 = vcmask 31744   ;;  %vm294_vm3 = vcmask 64512   ;;  %s891_s12 = sshll.u32 %s1367_s8, 2 }
  0x5c   : > { %916 = vmatprep.subr.mxu0 %v1182_v0  ;;  %921 = vmatprep.subr.mxu1 %v1182_v0  ;;  %v755_v3 = vld [vmem:[%s1464_s4] sm:$0xf]  ;;  %v892_v9 = vld [vmem:[%s1461_s1 + $0x4] sm:$0xf]  ;;  %v449_v13 = vld [vmem:[#allocation6 + $0x4] sm:$0xf] }
  0x5d   : > { %918 = vmatprep.mubr.msk.f32.mxu0 %vm1185_vm0, %v1182_v0  ;;  %923 = vmatprep.mubr.msk.f32.mxu1 %vm1185_vm0, %v1182_v0  ;;  %v748_v4 = vld [vmem:[%s1463_s3] sm:$0xf]  ;;  %v282_v14 = vld [vmem:[#allocation6] sm:$0xf]  ;;  %v897_v15 = vld [vmem:[%s1461_s1 + $0x8] sm:$0xf] }
  0x5e   : > { %1027 = vset.pattern.permute.xlu1 %v1186_v1  ;;  %1026 = vset.pattern.permute.xlu0 %v1186_v1  ;;  %v281_v10 = vld [vmem:[%s1461_s1] sm:$0xf]  ;;  %v673_v16 = vld [vmem:[#allocation6 + $0x8] sm:$0xf]  ;;  %s901_s24 = sshll.u32 %s1168_s21, 6  ;;  %s777_s10 = scalar_lea.sflag [#allocation5], %s1367_s8 }
  0x5f   : > { %370 = vrot.lane.b32.xlu1 %v277_v2, %s1183_s30  ;;  %289 = vrot.lane.b32.xlu0 %v277_v2, %s1184_s25  ;;  %s271_s30 = scalar_lea.vmem [#allocation8], %s891_s12  ;;  %s1411_s6 = scalar_lea.hbm %s1465_s5, %s901_s24 }
  0x60   : > { %s791_s25 = sshll.u32 %s271_s30, 4  ;;  %s1187_s21 = smov [#allocation8]   ;;  %s1413_s25 = int_to_ptr.vmem [resolvable:$true] %s791_s25 }
  0x61   : > { %s1090_s11 = scalar_lea.vmem %s1413_s25, 64  ;;  %s1094_s7 = sshll.u32 %s1187_s21, 4  ;;  %s1095_s7 = int_to_ptr.vmem [resolvable:$false] %s1094_s7 }
  0x62   : > { %p1091_p13 = scmp.ne.s32.totalorder %s1413_s25, %s1090_s11  ;;  %s1096_s27 = scalar_lea.vmem %s1095_s7, 128 }
  0x63   : > { %758 = vperm.xlu1 %1027, %v755_v3   ;;  %751 = vperm.xlu0 %1026, %v748_v4   ;;  %p1097_p12 = scmp.lt.s32.totalorder %s1413_s25, %s1095_s7  ;;  %p1098_p11 = scmp.lt.s32.totalorder %s1096_s27, %s1090_s11 }
  0x64   : > { %p1092_p6 = pnand %p1091_p13, %p1314_p10 }
  0x65   : > { %p1099_p0 = por %p1098_p11, %p1097_p12 }
  0x66   : > { %p1093_p8 = pneg %p1092_p6 }
  0x68   : > { %p1100_p5 = pnand %p1099_p0, %p1093_p8 }
  0xcd   : > { %v369_v5 = vpop.permute.xlu1 %368  ;;  %v288_v6 = vpop.permute.xlu0 %287 }
  0xd1   : > { %v371_v7 = vpop.permute.xlu1 %370  ;;  %v290_v8 = vpop.permute.xlu0 %289 }
  0xd2   : > { %v292_v11 = vsel %vm291_vm1, %v288_v6, %v290_v8  ;;  %v373_v12 = vsel %vm372_vm2, %v369_v5, %v371_v7 }
  0xd3   : > { %917 = vmatpush3.msra.mxu0 %v292_v11  ;;  %922 = vmatpush3.msra.mxu1 %v373_v12 }
  0xd4   : > { %919 = vmatmul.mubr.msk.f32.vlgmr.msra.gmra.mrb[0].mxu0 %vm294_vm3, %v892_v9  ;;  %924 = vmatmul.mubr.msk.f32.vlgmr.msra.gmra.mrb[0].mxu1 %vm294_vm3, %v281_v10 }
  0xd5   : > { %926 = vmatprep.subr.mxu0 %v1182_v0  ;;  %931 = vmatprep.subr.mxu1 %v1182_v0 }
  0xd6   : > { %927 = vmatpush3.msra.mxu0 %v292_v11  ;;  %932 = vmatpush3.msra.mxu1 %v373_v12 }
  0xd7   : > { %928 = vmatprep.mubr.msk.f32.mxu0 %vm1185_vm0, %v1182_v0  ;;  %933 = vmatprep.mubr.msk.f32.mxu1 %vm1185_vm0, %v1182_v0 }
  0xd8   : > { %929 = vmatmul.mubr.msk.f32.vlgmr.msra.gmra.mrb[2].mxu0 %vm294_vm3, %v449_v13  ;;  %934 = vmatmul.mubr.msk.f32.vlgmr.msra.gmra.mrb[2].mxu1 %vm294_vm3, %v282_v14 }
  0xd9   : > { %936 = vmatprep.subr.mxu0 %v1182_v0  ;;  %941 = vmatprep.subr.mxu1 %v1182_v0 }
  0xda   : > { %937 = vmatpush3.msra.mxu0 %v277_v2  ;;  %938 = vmatprep.mubr.msk.f32.mxu0 %vm1185_vm0, %v1182_v0 }
  0xdb   : > { %942 = vmatpush3.msra.mxu1 %v277_v2  ;;  %943 = vmatprep.mubr.msk.f32.mxu1 %vm1185_vm0, %v1182_v0 }
  0xdc   : > { %939 = vmatmul.mubr.msk.f32.vlgmr.msra.gmra.mrb[4].mxu0 %vm294_vm3, %v897_v15  ;;  %944 = vmatmul.mubr.msk.f32.vlgmr.msra.gmra.mrb[4].mxu1 %vm294_vm3, %v673_v16 }
  0xe2   : > { %v752_v27 = vpop.permute.xlu0 %751  ;;  %v759_v35 = vpop.permute.xlu1 %758 }
 0x1a7   : > { %v364_v17 = vpop.f32.mrb[0].mxu0  ;;  %v444_v18 = vpop.f32.mrb[0].mxu1 }
 0x1a8   : > { %v920_v19 = vpop.f32.mrb[1].mxu0  ;;  %v445_v20 = vadd.f32 %v444_v18, %v364_v17  ;;  %v925_v21 = vpop.f32.mrb[1].mxu1 }
 0x1ab   : > { %v519_v22 = vpop.f32.mrb[2].mxu0  ;;  %v592_v23 = vpop.f32.mrb[2].mxu1 }
 0x1ac   : > { %v930_v24 = vpop.f32.mrb[3].mxu0  ;;  %v593_v25 = vadd.f32 %v592_v23, %v519_v22  ;;  %v935_v26 = vpop.f32.mrb[3].mxu1 }
 0x1af   : > { %v667_v28 = vpop.f32.mrb[4].mxu0  ;;  %v743_v29 = vpop.f32.mrb[4].mxu1 }
 0x1b0   : > { %v671_v30 = vadd.f32 %v667_v28, %v445_v20  ;;  %v747_v31 = vadd.f32 %v743_v29, %v593_v25  ;;  %v940_v32 = vpop.f32.mrb[5].mxu0  ;;  %v945_v33 = vpop.f32.mrb[5].mxu1 }
 0x1b2   : > { %v754_v34 = vadd.f32 %v752_v27, %v671_v30  ;;  %v761_v37 = vadd.f32 %v759_v35, %v747_v31 }
 0x1b4   : > { %v762_v36 = vmul.f32 0.5, %v754_v34 }
 0x1b6   : > { %1028 = vtanh.f32 %v762_v36 }
 0x1b7   : > { %1030 = vtanh.f32 %v761_v37 }
 0x1c0   : > { %v1029_v38 = vpop.eup %1028 }
 0x1c1   : > { %v764_v39 = vadd.f32 1.0, %v1029_v38  ;;  %v1031_v41 = vpop.eup %1030 }
 0x1c3   : > { %v765_v40 = vmul.f32 0.5, %v764_v39 }
 0x1c5   : > { %v767_v42 = vmul.f32 %v1031_v41, %v765_v40 }
 0x1c7   : > { %768 = vst [vmem:[%s271_s30] sm:$0xf] %v767_v42 }
 0x1c8   : > { %1103 = shalt.err (!%p1100_p5)
}
 0x1c9   : > { %s1104_s8 = scalar_lea.hbm %s1411_s6, 64  ;;  %s1108_s17 = scalar_lea.hbm %s1465_s5, 128 }
 0x1ca   : > { %p1105_p9 = scmp.ne.s32.totalorder %s1411_s6, %s1104_s8  ;;  %p1109_p7 = scmp.lt.u32.totalorder %s1411_s6, %s1465_s5 }
 0x1cb   : > { %p1110_p3 = scmp.lt.u32.totalorder %s1108_s17, %s1104_s8  ;;  %p1112_p13 = scmp.lt.u32.totalorder %s1104_s8, %s1411_s6 }
 0x1cc   : > { %p1106_p1 = pnand %p1105_p9, %p1314_p10 }
 0x1cd   : > { %p1111_p4 = por %p1110_p3, %p1109_p7 }
 0x1ce   : > { %p1107_p2 = pneg %p1106_p1 }
 0x1cf   : > { %p1113_p6 = por %p1112_p13, %p1111_p4 }
 0x1d1   : > { %p1114_p8 = pnand %p1113_p6, %p1107_p2 }
 0x1d3   : > { %1117 = shalt.err (!%p1114_p8)
}
 0x1d4   : > { %952 = dma.vmem_to_hbm [thread:$0]  (%p1314_p10), %s1413_s25, 64, %s1411_s6, %s777_s10  }
 0x1d5 PF: > { %s803_s30 = sand.u32 1, %s1156_s18   ;;  %p1483_p12 = scmp.ne.s32.totalorder %s1473_s29, 0 }
 0x1d6   : > { %p1484_p11 = scmp.ge.s32.totalorder %s1176_s23, 2  ;;  %s804_s26 = scalar_lea.sflag [#allocation5], %s803_s30 }
 0x1d8   : > { %p963_p0 = pnand %p1484_p11, %p1483_p12 }
 0x1da   : > { %1151 = dma.done.wait (!%p963_p0), %s804_s26, 64  }
 0x1db   : > { %1153 = vsyncadd (!%p963_p0), %s804_s26, 4294967232  ;;  %s22_s23 = sadd.s32 1, %s1176_s23   ;;  %s1485_s18 = smov %s1160_s19 }
 0x1dc   : > { %p19_p5 = scmp.ge.s32.totalorder %s22_s23, 4   ;;  %s1486_s19 = smov %s1164_s20 }
 0x1dd   : > { %s1487_s20 = smov %s1323_s15  ;;  %s1488_s21 = smov %s1172_s22 }
 0x1de   : > { %s1489_s22 = smov %s1491_s9  ;;  %21 = sbr.rel (!%p19_p5) target bundleno = 7 (0x7), region = 101 }
 0x1e5   :  { %809 = vsyncpa [#allocation4], 1 }
 0x1e6   :  { %811 = vsyncpa [#allocation4 + $0x1], 1 }
 0x1e7   :  { %812 = vsyncpa [#allocation7], 1 }
 0x1e8   :  { %813 = vsyncpa [#allocation5], 1 }
 0x1e9   :  { %815 = vsyncpa [#allocation5 + $0x1], 1 }

</bundles_post_ra>
